<compile_context>
chip_gen: v5e
topology: v5e:2x2
jax: 0.10.0
libtpu: 0.0.40
codegen_flags: <defaults>
</compile_context>

<pallas_src>
import functools

import jax
import jax.numpy as jnp
from jax.experimental import pallas as pl
from jax.experimental.pallas import tpu as pltpu


def _round_up(x, m):
    return ((x + m - 1) // m) * m


# ---------------------------------------------------------------------------
# Kernel
# ---------------------------------------------------------------------------
def mlp_kernel(x_ref, w1_ref, b1_ref, w2_ref, b2_ref, w3_ref, b3_ref, o_ref):
    # x arrives f32; cast to bf16 in-kernel. Weights bf16, biases f32,
    # all accumulation in f32 on the MXU.
    x = x_ref[...].astype(w1_ref.dtype)
    # fc1: Linear + ReLU (Dropout = identity in eval mode).
    h1 = jnp.dot(x, w1_ref[...], preferred_element_type=jnp.float32) + b1_ref[...]
    h1 = jnp.maximum(h1, 0.0).astype(w2_ref.dtype)
    # fc2: Linear + ReLU (Dropout = identity in eval mode).
    h2 = jnp.dot(h1, w2_ref[...], preferred_element_type=jnp.float32) + b2_ref[...]
    h2 = jnp.maximum(h2, 0.0).astype(w3_ref.dtype)
    # fc3: Linear
    out = jnp.dot(h2, w3_ref[...], preferred_element_type=jnp.float32) + b3_ref[...]
    o_ref[...] = out.astype(o_ref.dtype)


# ---------------------------------------------------------------------------
# Per-chip VMEM policy
# ---------------------------------------------------------------------------
_VMEM_POLICY_CACHE = None


def _vmem_policy():
    """Returns (tile_budget_bytes, vmem_limit_bytes) from the chip's VMEM size."""
    global _VMEM_POLICY_CACHE
    if _VMEM_POLICY_CACHE is not None:
        return _VMEM_POLICY_CACHE
    cap = None
    try:
        info = pltpu.get_tpu_info()
        for attr in ("vmem_capacity_bytes", "vmem_size_bytes", "vmem_bytes"):
            val = getattr(info, attr, None)
            if isinstance(val, int) and val > 0:
                cap = val
                break
    except Exception:
        cap = None
    if cap is None:
        cap = 64 * 1024 * 1024  # conservative fallback: v7x per-TensorCore VMEM
    # ~3/4 of physical VMEM for this kernel, headroom for Mosaic scratch:
    #   128 MiB (v5e/v6e) -> limit 96 MiB, tile budget 88 MiB
    #    64 MiB (v7x)     -> limit 48 MiB, tile budget 40 MiB
    vmem_limit = min((cap * 3) // 4, 100 * 1024 * 1024)
    budget = max(vmem_limit - 8 * 1024 * 1024, 16 * 1024 * 1024)
    _VMEM_POLICY_CACHE = (budget, vmem_limit)
    return _VMEM_POLICY_CACHE


def _pick_tm(batch, in_dim, n_p, out_p, budget_bytes):
    """Largest batch tile whose VMEM footprint fits the per-chip budget."""
    # Resident operands: constant index_map => no re-DMA, but the pipeline
    # still allocates the default buffer_count=2 buffers per input => 2x.
    resident = 2 * (
        2 * (in_dim * n_p + n_p * n_p + n_p * out_p)   # bf16 weights
        + 4 * (2 * n_p + out_p)                        # f32 biases
    )
    # TODO(synk): pipeline_mode=pl.Buffered(1) on the resident operands would
    # halve `resident`; kept at the default here for lowering robustness.
    #
    # Cap tm so the grid has >= 2 steps: shards the "parallel" batch axis
    # across v7x's two TensorCores and keeps the x/out double-buffer alive.
    max_tm = max(8, _round_up(pl.cdiv(batch, 2), 8))
    for tm in (4096, 2048, 1024, 512, 256, 128, 64, 32, 16, 8):
        if tm > max_tm:
            continue
        per_tile = (
            2 * tm * in_dim * 4        # double-buffered f32 x tile
            + 2 * tm * out_p * 4       # double-buffered f32 out tile
            + tm * in_dim * 2          # in-kernel bf16 copy of x
            + 2 * tm * n_p * (4 + 2)   # f32 + bf16 copies of h1 and h2
            + tm * out_p * 4           # f32 epilogue before the store
        )
        if resident + per_tile <= budget_bytes:
            return tm
    return 8


# ---------------------------------------------------------------------------
# Parameter preparation (hoisted out of the per-call path)
# ---------------------------------------------------------------------------
def prepare_params(w1, b1, w2, b2, w3, b3):
    """Pad + cast parameters once.

    wK: (fan_in, fan_out) (transposed vs PyTorch's (out, in)); bK: (fan_out,)
    or (1, fan_out).  Returns lane-dense bf16 weights + f32 biases and out_dim.
    """
    in_dim, neurons = w1.shape
    out_dim = w3.shape[1]
    n_p = _round_up(neurons, 128)
    out_p = _round_up(out_dim, 128)
    bf16, f32 = jnp.bfloat16, jnp.float32
    w1_p = jnp.zeros((in_dim, n_p), bf16).at[:, :neurons].set(w1.astype(bf16))
    w2_p = jnp.zeros((n_p, n_p), bf16).at[:neurons, :neurons].set(w2.astype(bf16))
    w3_p = jnp.zeros((n_p, out_p), bf16).at[:neurons, :out_dim].set(w3.astype(bf16))
    b1_p = jnp.zeros((1, n_p), f32).at[:, :neurons].set(jnp.reshape(b1, (1, -1)).astype(f32))
    b2_p = jnp.zeros((1, n_p), f32).at[:, :neurons].set(jnp.reshape(b2, (1, -1)).astype(f32))
    b3_p = jnp.zeros((1, out_p), f32).at[:, :out_dim].set(jnp.reshape(b3, (1, -1)).astype(f32))
    return (w1_p, b1_p, w2_p, b2_p, w3_p, b3_p), out_dim


# ---------------------------------------------------------------------------
# Forward
# ---------------------------------------------------------------------------
@functools.partial(jax.jit, static_argnames=("out_dim",))
def fully_connected_forward(x, w1_p, b1_p, w2_p, b2_p, w3_p, b3_p, *, out_dim):
    """x: (B, in_dim) f32.  Returns f32 (B, out_dim) == PyTorch forward (eval)."""
    B, in_dim = x.shape
    n_p = w1_p.shape[1]
    out_p = w3_p.shape[1]

    budget, vmem_limit = _vmem_policy()
    tm = _pick_tm(B, in_dim, n_p, out_p, budget)
    grid = (pl.cdiv(B, tm),)

    flops = 2 * B * (in_dim * n_p + n_p * n_p + n_p * out_p)
    bytes_accessed = (
        x.size * 4
        + (w1_p.size + w2_p.size + w3_p.size) * 2
        + (b1_p.size + b2_p.size + b3_p.size) * 4
        + B * out_p * 4
    )

    out_padded = pl.pallas_call(
        mlp_kernel,
        out_shape=jax.ShapeDtypeStruct((B, out_p), jnp.float32),
        grid_spec=pltpu.PrefetchScalarGridSpec(
            num_scalar_prefetch=0,
            grid=grid,
            in_specs=[
                pl.BlockSpec((tm, in_dim), lambda i: (i, 0)),    # x tile (pipelined)
                pl.BlockSpec((in_dim, n_p), lambda i: (0, 0)),   # W1 (resident)
                pl.BlockSpec((1, n_p), lambda i: (0, 0)),        # b1 (resident)
                pl.BlockSpec((n_p, n_p), lambda i: (0, 0)),      # W2 (resident)
                pl.BlockSpec((1, n_p), lambda i: (0, 0)),        # b2 (resident)
                pl.BlockSpec((n_p, out_p), lambda i: (0, 0)),    # W3 (resident)
                pl.BlockSpec((1, out_p), lambda i: (0, 0)),      # b3 (resident)
            ],
            out_specs=pl.BlockSpec((tm, out_p), lambda i: (i, 0)),
        ),
        compiler_params=pltpu.CompilerParams(
            dimension_semantics=("parallel",),
            vmem_limit_bytes=vmem_limit,
        ),
        cost_estimate=pl.CostEstimate(
            flops=flops, transcendentals=0, bytes_accessed=bytes_accessed
        ),
    )(x, w1_p, b1_p, w2_p, b2_p, w3_p, b3_p)

    if out_p != out_dim:
        return out_padded[:, :out_dim]
    return out_padded


def init_linear(key, fan_in, fan_out):
    """Deterministic PyTorch-style Linear init: U(-1/sqrt(fan_in), 1/sqrt(fan_in))."""
    kw, kb = jax.random.split(key)
    bound = 1.0 / jnp.sqrt(fan_in)
    w = jax.random.uniform(kw, (fan_in, fan_out), jnp.float32, -bound, bound)
    b = jax.random.uniform(kb, (1, fan_out), jnp.float32, -bound, bound)
    return w, b


if __name__ == "__main__":
    # Small shapes consistent with the module.
    batch, in_dim, neurons, out_dim = 8, 32, 64, 16

    key = jax.random.PRNGKey(0)
    kx, k1, k2, k3 = jax.random.split(key, 4)

    x = jax.random.normal(kx, (batch, in_dim), jnp.float32)
    w1, b1 = init_linear(k1, in_dim, neurons)
    w2, b2 = init_linear(k2, neurons, neurons)
    w3, b3 = init_linear(k3, neurons, out_dim)

    # One-time parameter prep (padding + bf16 cast hoisted out of the forward).
    params, out_dim_p = prepare_params(w1, b1, w2, b2, w3, b3)
    params = tuple(jax.block_until_ready(p) for p in params)

    out = fully_connected_forward(x, *params, out_dim=out_dim_p)
    jax.block_until_ready(out)
    assert out.shape == (batch, out_dim)

    # Reference 1: pure-JAX with the same bf16 operand quantization (tight check).
    bf = lambda a: a.astype(jnp.bfloat16)
    h1 = jnp.maximum(jnp.dot(bf(x), bf(w1), preferred_element_type=jnp.float32) + b1, 0.0)
    h2 = jnp.maximum(jnp.dot(bf(h1), bf(w2), preferred_element_type=jnp.float32) + b2, 0.0)
    ref_bf16 = jnp.dot(bf(h2), bf(w3), preferred_element_type=jnp.float32) + b3
    assert jnp.allclose(out, ref_bf16, atol=2e-3, rtol=2e-3)

    # Reference 2: full-f32 math (loose sanity check on bf16 operand rounding).
    ref_f32 = jnp.maximum(x @ w1 + b1, 0.0)
    ref_f32 = jnp.maximum(ref_f32 @ w2 + b2, 0.0)
    ref_f32 = ref_f32 @ w3 + b3
    assert jnp.allclose(out, ref_f32, atol=5e-2, rtol=5e-2)

    print("KERNEL_OK")
</pallas_src>

<mosaic_0001>
module attributes {stable_mosaic.version = 11 : i64} {
  func.func @mlp_kernel(%arg0: i32, %arg1: memref<8x32xf32, #tpu.memory_space<vmem>>, %arg2: memref<32x128xbf16, #tpu.memory_space<vmem>>, %arg3: memref<1x128xf32, #tpu.memory_space<vmem>>, %arg4: memref<128x128xbf16, #tpu.memory_space<vmem>>, %arg5: memref<1x128xf32, #tpu.memory_space<vmem>>, %arg6: memref<128x128xbf16, #tpu.memory_space<vmem>>, %arg7: memref<1x128xf32, #tpu.memory_space<vmem>>, %arg8: memref<8x128xf32, #tpu.memory_space<vmem>>) attributes {dimension_semantics = [#tpu.dimension_semantics<parallel>], iteration_bounds = array<i64: 1>, scalar_prefetch = 0 : i64, scratch_operands = 0 : i64, tpu.core_type = #tpu.core_type<tc>, window_params = [{transform_indices = @transform_0, window_bounds = array<i64: 8, 32>}, {pipeline_mode = #tpu.pipeline_mode<synchronous>, transform_indices = @transform_1, window_bounds = array<i64: 32, 128>}, {pipeline_mode = #tpu.pipeline_mode<synchronous>, transform_indices = @transform_2, window_bounds = array<i64: 1, 128>}, {pipeline_mode = #tpu.pipeline_mode<synchronous>, transform_indices = @transform_3, window_bounds = array<i64: 128, 128>}, {pipeline_mode = #tpu.pipeline_mode<synchronous>, transform_indices = @transform_4, window_bounds = array<i64: 1, 128>}, {pipeline_mode = #tpu.pipeline_mode<synchronous>, transform_indices = @transform_5, window_bounds = array<i64: 128, 128>}, {pipeline_mode = #tpu.pipeline_mode<synchronous>, transform_indices = @transform_6, window_bounds = array<i64: 1, 128>}, {transform_indices = @transform_7, window_bounds = array<i64: 8, 128>}]} {
    %c0 = arith.constant 0 : index
    %c0_0 = arith.constant 0 : index
    %0 = vector.load %arg1[%c0, %c0_0] : memref<8x32xf32, #tpu.memory_space<vmem>>, vector<8x32xf32>
    %1 = arith.truncf %0 : vector<8x32xf32> to vector<8x32xbf16>
    %c0_1 = arith.constant 0 : index
    %c0_2 = arith.constant 0 : index
    %2 = vector.load %arg2[%c0_1, %c0_2] : memref<32x128xbf16, #tpu.memory_space<vmem>>, vector<32x128xbf16>
    %cst = arith.constant dense<0.000000e+00> : vector<8x128xf32>
    %3 = tpu.matmul %1, %2, %cst {dimension_numbers = #tpu.dot_dimension_numbers<[1], [0], [0], [1], [0, 0, 1, 1], [], []>} : vector<8x32xbf16>, vector<32x128xbf16>, vector<8x128xf32> -> vector<8x128xf32>
    %c0_3 = arith.constant 0 : index
    %c0_4 = arith.constant 0 : index
    %4 = vector.load %arg3[%c0_3, %c0_4] : memref<1x128xf32, #tpu.memory_space<vmem>>, vector<1x128xf32>
    %5 = vector.broadcast %4 : vector<1x128xf32> to vector<8x128xf32>
    %6 = arith.addf %3, %5 : vector<8x128xf32>
    %cst_5 = arith.constant 0.000000e+00 : f32
    %7 = vector.broadcast %cst_5 : f32 to vector<8x128xf32>
    %8 = arith.maximumf %6, %7 : vector<8x128xf32>
    %9 = arith.truncf %8 : vector<8x128xf32> to vector<8x128xbf16>
    %c0_6 = arith.constant 0 : index
    %c0_7 = arith.constant 0 : index
    %10 = vector.load %arg4[%c0_6, %c0_7] : memref<128x128xbf16, #tpu.memory_space<vmem>>, vector<128x128xbf16>
    %cst_8 = arith.constant dense<0.000000e+00> : vector<8x128xf32>
    %11 = tpu.matmul %9, %10, %cst_8 {dimension_numbers = #tpu.dot_dimension_numbers<[1], [0], [0], [1], [0, 0, 1, 1], [], []>} : vector<8x128xbf16>, vector<128x128xbf16>, vector<8x128xf32> -> vector<8x128xf32>
    %c0_9 = arith.constant 0 : index
    %c0_10 = arith.constant 0 : index
    %12 = vector.load %arg5[%c0_9, %c0_10] : memref<1x128xf32, #tpu.memory_space<vmem>>, vector<1x128xf32>
    %13 = vector.broadcast %12 : vector<1x128xf32> to vector<8x128xf32>
    %14 = arith.addf %11, %13 : vector<8x128xf32>
    %cst_11 = arith.constant 0.000000e+00 : f32
    %15 = vector.broadcast %cst_11 : f32 to vector<8x128xf32>
    %16 = arith.maximumf %14, %15 : vector<8x128xf32>
    %17 = arith.truncf %16 : vector<8x128xf32> to vector<8x128xbf16>
    %c0_12 = arith.constant 0 : index
    %c0_13 = arith.constant 0 : index
    %18 = vector.load %arg6[%c0_12, %c0_13] : memref<128x128xbf16, #tpu.memory_space<vmem>>, vector<128x128xbf16>
    %cst_14 = arith.constant dense<0.000000e+00> : vector<8x128xf32>
    %19 = tpu.matmul %17, %18, %cst_14 {dimension_numbers = #tpu.dot_dimension_numbers<[1], [0], [0], [1], [0, 0, 1, 1], [], []>} : vector<8x128xbf16>, vector<128x128xbf16>, vector<8x128xf32> -> vector<8x128xf32>
    %c0_15 = arith.constant 0 : index
    %c0_16 = arith.constant 0 : index
    %20 = vector.load %arg7[%c0_15, %c0_16] : memref<1x128xf32, #tpu.memory_space<vmem>>, vector<1x128xf32>
    %21 = vector.broadcast %20 : vector<1x128xf32> to vector<8x128xf32>
    %22 = arith.addf %19, %21 : vector<8x128xf32>
    %c0_17 = arith.constant 0 : index
    %c0_18 = arith.constant 0 : index
    %23 = vector.load %arg8[%c0_17, %c0_18] : memref<8x128xf32, #tpu.memory_space<vmem>>, vector<8x128xf32>
    tpu.vector_store %arg8[%c0_17, %c0_18], %22 {strides = array<i32>} : memref<8x128xf32, #tpu.memory_space<vmem>>, vector<8x128xf32>,
    return
  }
  func.func @transform_0(%arg0: i32) -> (i32, i32) {
    %c0_i32 = arith.constant 0 : i32
    %c0_i32_0 = arith.constant 0 : i32
    return %arg0, %c0_i32 : i32, i32
  }
  func.func @transform_1(%arg0: i32) -> (i32, i32) {
    %c0_i32 = arith.constant 0 : i32
    %c0_i32_0 = arith.constant 0 : i32
    %c0_i32_1 = arith.constant 0 : i32
    return %c0_i32, %c0_i32_0 : i32, i32
  }
  func.func @transform_2(%arg0: i32) -> (i32, i32) {
    %c0_i32 = arith.constant 0 : i32
    %c0_i32_0 = arith.constant 0 : i32
    %c0_i32_1 = arith.constant 0 : i32
    return %c0_i32, %c0_i32_0 : i32, i32
  }
  func.func @transform_3(%arg0: i32) -> (i32, i32) {
    %c0_i32 = arith.constant 0 : i32
    %c0_i32_0 = arith.constant 0 : i32
    %c0_i32_1 = arith.constant 0 : i32
    return %c0_i32, %c0_i32_0 : i32, i32
  }
  func.func @transform_4(%arg0: i32) -> (i32, i32) {
    %c0_i32 = arith.constant 0 : i32
    %c0_i32_0 = arith.constant 0 : i32
    %c0_i32_1 = arith.constant 0 : i32
    return %c0_i32, %c0_i32_0 : i32, i32
  }
  func.func @transform_5(%arg0: i32) -> (i32, i32) {
    %c0_i32 = arith.constant 0 : i32
    %c0_i32_0 = arith.constant 0 : i32
    %c0_i32_1 = arith.constant 0 : i32
    return %c0_i32, %c0_i32_0 : i32, i32
  }
  func.func @transform_6(%arg0: i32) -> (i32, i32) {
    %c0_i32 = arith.constant 0 : i32
    %c0_i32_0 = arith.constant 0 : i32
    %c0_i32_1 = arith.constant 0 : i32
    return %c0_i32, %c0_i32_0 : i32, i32
  }
  func.func @transform_7(%arg0: i32) -> (i32, i32) {
    %c0_i32 = arith.constant 0 : i32
    %c0_i32_0 = arith.constant 0 : i32
    return %arg0, %c0_i32 : i32, i32
  }
}

</mosaic_0001>

<bundles_post_ra>
// kernel: fully_connected_forward.1
= control target key start
LH: loop header
LB: loop body
LE: loop exit
PB: predicated region body
PF: predicated region fallthrough
CT: control target
= control target key end

     0   :  { %12 = vsyncpa [#allocation3], 0  ;;  %s614_s0 = inlined_call_operand.hbm [shape: f32[8,32], index: 0, kind: input, shape index: {}]   ;;  %s615_s1 = inlined_call_operand.hbm [shape: bf16[32,128], index: 1, kind: input, shape index: {}]   ;;  %s616_s2 = inlined_call_operand.vmem [shape: f32[1,128], index: 2, kind: input, shape index: {}]   ;;  %s617_s3 = inlined_call_operand.hbm [shape: bf16[128,128], index: 3, kind: input, shape index: {}]   ;;  %s618_s4 = inlined_call_operand.vmem [shape: f32[1,128], index: 4, kind: input, shape index: {}]   ;;  %s619_s5 = inlined_call_operand.hbm [shape: bf16[128,128], index: 5, kind: input, shape index: {}]   ;;  %s620_s6 = inlined_call_operand.vmem [shape: f32[1,128], index: 6, kind: input, shape index: {}]   ;;  %s621_s7 = inlined_call_operand.hbm [shape: f32[8,128], index: 7, kind: output, shape index: {}]  }
   0x1   :  { %13 = vsyncpa [#allocation6], 0 }
   0x2   :  { %14 = vsyncpa [#allocation9], 0  ;;  %s31_s26 = sshll.u32 %s615_s1, 4  ;;  %s32_s26 = int_to_ptr.hbm [resolvable:$true] %s31_s26 }
   0x3   :  { %15 = vsyncpa [#allocation4], 0  ;;  %s543_s27 = smov [#allocation5]   ;;  %s21_s8 = sshll.u32 %s614_s0, 4  ;;  %s22_s8 = int_to_ptr.hbm [resolvable:$true] %s21_s8 }
   0x4   :  { %s33_s28 = sshll.u32 %s543_s27, 4  ;;  %s544_s9 = smov 64   ;;  %s34_s28 = int_to_ptr.vmem [resolvable:$true] %s33_s28 }
   0x5   :  { %s545_s10 = smov 4   ;;  %s546_s11 = smov [#allocation2]  }
   0x6   :  { %39 = dma.hbm_to_vmem [thread:$0]  %s32_s26, 256, %s34_s28, [#allocation6], %s544_s9, %s544_s9, %s545_s10  }
   0x7   :  { %s23_s12 = sshll.u32 %s546_s11, 4  ;;  %s46_s15 = sshll.u32 %s617_s3, 4  ;;  %s24_s12 = int_to_ptr.vmem [resolvable:$true] %s23_s12  ;;  %s47_s15 = int_to_ptr.hbm [resolvable:$true] %s46_s15 }
   0x8   :  { %26 = dma.hbm_to_vmem [thread:$0]  %s22_s8, 128, %s24_s12, [#allocation3]  }
   0x9   :  { %s61_s17 = sshll.u32 %s619_s5, 4  ;;  %s547_s18 = smov [#allocation7]   ;;  %s62_s17 = int_to_ptr.hbm [resolvable:$true] %s61_s17 }
   0xa   :  { %s48_s19 = sshll.u32 %s547_s18, 4  ;;  %s548_s0 = smov [#allocation8]   ;;  %s49_s19 = int_to_ptr.vmem [resolvable:$true] %s48_s19 }
   0xb   :  { %54 = dma.hbm_to_vmem [thread:$0]  %s47_s15, 1024, %s49_s19, [#allocation6], %s544_s9, %s544_s9, %s545_s10  }
   0xc   :  { %s63_s20 = sshll.u32 %s548_s0, 4  ;;  %s64_s20 = int_to_ptr.vmem [resolvable:$true] %s63_s20 }
   0xd   :  { %69 = dma.hbm_to_vmem [thread:$0]  %s62_s17, 1024, %s64_s20, [#allocation9], %s544_s9, %s544_s9, %s545_s10  }
   0xe   :  { %535 = dma.done.wait [#allocation3], 128  }
   0xf   :  { %536 = vsyncadd [#allocation3], 4294967168 }
  0x10   :  { %537 = dma.done.wait [#allocation6], 1280  }
  0x11   :  { %538 = vsyncadd [#allocation6], 4294966016 }
  0x12   :  { %539 = dma.done.wait [#allocation9], 1024  }
  0x13   :  { %540 = vsyncadd [#allocation9], 4294966272  ;;  %v388_v0 = vld [vmem:[#allocation5 + $0x8] sm:$0xff]  ;;  %v387_v2 = vld [vmem:[#allocation5] sm:$0xff]  ;;  %vm111_vm0 = vcmask 261120   ;;  %s549_s24 = smov [#allocation10]  }
  0x14   :  { %v396_v1 = vld [vmem:[#allocation7 + $0x38] sm:$0xff]  ;;  %121 = vmatpush.bf16.msra.mxu0 %v388_v0  ;;  %v89_v3 = vld [vmem:[#allocation2] sm:$0xff]  ;;  %v395_v4 = vld [vmem:[#allocation7 + $0x30] sm:$0xff]  ;;  %s300_s25 = sshll.u32 %s549_s24, 4  ;;  %s302_s28 = sshll.u32 %s621_s7, 4  ;;  %s301_s25 = int_to_ptr.vmem [resolvable:$true] %s300_s25  ;;  %s303_s28 = int_to_ptr.hbm [resolvable:$true] %s302_s28 }
  0x15   :  { %198 = vmatpush.bf16.msra.mxu1 %v396_v1  ;;  %v90_v5 = vpack.c.bf16 %v89_v3, %v89_v3  ;;  %v394_v6 = vld [vmem:[#allocation7 + $0x28] sm:$0xff]  ;;  %v393_v7 = vld [vmem:[#allocation7 + $0x20] sm:$0xff]  ;;  %v392_v8 = vld [vmem:[#allocation7 + $0x18] sm:$0xff] }
  0x16   :  { %v391_v9 = vld [vmem:[#allocation7 + $0x10] sm:$0xff]  ;;  %v390_v10 = vld [vmem:[#allocation7 + $0x8] sm:$0xff]  ;;  %v389_v11 = vld [vmem:[#allocation7] sm:$0xff] }
  0x17   :  { %v404_v12 = vld [vmem:[#allocation8 + $0x38] sm:$0xff]  ;;  %v403_v13 = vld [vmem:[#allocation8 + $0x30] sm:$0xff]  ;;  %v402_v14 = vld [vmem:[#allocation8 + $0x28] sm:$0xff] }
  0x18   :  { %122 = vmatpush.bf16.msra.mxu0 %v387_v2  ;;  %281 = vmatpush.bf16.msra.mxu2 %v404_v12  ;;  %v401_v15 = vld [vmem:[#allocation8 + $0x20] sm:$0xff]  ;;  %v400_v16 = vld [vmem:[#allocation8 + $0x18] sm:$0xff]  ;;  %v399_v17 = vld [vmem:[#allocation8 + $0x10] sm:$0xff] }
  0x19   :  { %199 = vmatpush.bf16.msra.mxu1 %v395_v4  ;;  %v412_v18 = vld [vmem:[%s616_s2] ss:$0 sm:$0xff]  ;;  %v397_v25 = vld [vmem:[#allocation8] sm:$0xff] }
  0x1a   :  { %v398_v24 = vld [vmem:[#allocation8 + $0x8] sm:$0xff] }
  0x1b   :  { %322 = vmatmul.msk.bf16.vlgmr.msra.gmra.mxu0 %vm111_vm0, %v90_v5  ;;  %v413_v26 = vld [vmem:[%s618_s4] ss:$0 sm:$0xff] }
  0x1c   :  { %282 = vmatpush.bf16.msra.mxu2 %v403_v13  ;;  %v414_v32 = vld [vmem:[%s620_s6] ss:$0 sm:$0xff] }
  0x1d   :  { %200 = vmatpush.bf16.msra.mxu1 %v394_v6 }
  0x20   :  { %283 = vmatpush.bf16.msra.mxu2 %v402_v14 }
  0x21   :  { %201 = vmatpush.bf16.msra.mxu1 %v393_v7 }
  0x24   :  { %284 = vmatpush.bf16.msra.mxu2 %v401_v15 }
  0x25   :  { %202 = vmatpush.bf16.msra.mxu1 %v392_v8 }
  0x28   :  { %285 = vmatpush.bf16.msra.mxu2 %v400_v16 }
  0x29   :  { %203 = vmatpush.bf16.msra.mxu1 %v391_v9 }
  0x2c   :  { %286 = vmatpush.bf16.msra.mxu2 %v399_v17 }
  0x2d   :  { %204 = vmatpush.bf16.msra.mxu1 %v390_v10 }
  0x30   :  { %287 = vmatpush.bf16.msra.mxu2 %v398_v24 }
  0x31   :  { %205 = vmatpush.bf16.msra.mxu1 %v389_v11 }
  0x34   :  { %288 = vmatpush.bf16.msra.mxu2 %v397_v25 }
  0x98   :  { %v124_v19 = vpop.f32.mrf.mxu0 }
  0x99   :  { %v125_v20 = vadd.f32 %v412_v18, %v124_v19 }
  0x9b   :  { %v128_v21 = vmax.f32 %v125_v20, 0.0 }
  0x9d   :  { %v129_v22 = vpack.c.bf16 %v128_v21, %v128_v21 }
  0x9f   :  { %206 = vmatmul.bf16.vlgmr.msra.gmra.mxu1 %v129_v22 }
  0xa0   :  { %v126_v23 = vpop.f32.mrf.mxu0 }
 0x11c   :  { %v207_v27 = vpop.f32.mrf.mxu1 }
 0x11d   :  { %v208_v28 = vadd.f32 %v413_v26, %v207_v27 }
 0x11f   :  { %v211_v29 = vmax.f32 %v208_v28, 0.0 }
 0x121   :  { %v212_v30 = vpack.c.bf16 %v211_v29, %v211_v29 }
 0x123   :  { %289 = vmatmul.bf16.vlgmr.msra.gmra.mxu2 %v212_v30 }
 0x124   :  { %v209_v31 = vpop.f32.mrf.mxu1 }
 0x1a6   :  { %v290_v33 = vpop.f32.mrf.mxu2 }
 0x1a7   :  { %v291_v34 = vadd.f32 %v414_v32, %v290_v33 }
 0x1a9   :  { %294 = vst [vmem:[#allocation10] sm:$0xff] %v291_v34 }
 0x1aa   :  { %305 = dma.vmem_to_hbm [thread:$0]  %s301_s25, 128, %s303_s28, [#allocation4]  }
 0x1ae   :  { %v292_v35 = vpop.f32.mrf.mxu2 }
 0x1af   :  { %541 = dma.done.wait [#allocation4], 128  }
 0x1b0   :  { %542 = vsyncadd [#allocation4], 4294967168 }
 0x1b1   :  { %310 = vsyncpa [#allocation3], 1 }
 0x1b2   :  { %311 = vsyncpa [#allocation6], 1 }
 0x1b3   :  { %312 = vsyncpa [#allocation9], 1 }
 0x1b4   :  { %313 = vsyncpa [#allocation4], 1 }

</bundles_post_ra>
